<compile_context>
chip_gen: v6e
topology: v6e:2x2x1
jax: 0.10.0
libtpu: 0.0.40
codegen_flags: <defaults>
</compile_context>

<pallas_src>
import jax
import jax.numpy as jnp
from jax.experimental import pallas as pl
from jax.experimental.pallas import tpu as pltpu


# ---------------------------------------------------------------- kernels
def _relubias_half_kernel(x_ref, o_ref):
    # Block holds ONLY the second (sigma) half of the feature dim.
    x = x_ref[...]
    o_ref[...] = (jnp.maximum(x, 0.0) + jnp.asarray(0.1, x.dtype)).astype(o_ref.dtype)


def _relubias_full_kernel(x_ref, o_ref):
    # Full feature width per block; single lane-dense unmasked store.
    F_dim = x_ref.shape[-1]
    L = F_dim // 2  # static compile-time constant
    x = x_ref[...]
    col = jax.lax.broadcasted_iota(jnp.int32, x.shape, dimension=x.ndim - 1)
    y = jnp.maximum(x, 0.0) + jnp.asarray(0.1, x.dtype)
    o_ref[...] = jnp.where(col >= L, y, x).astype(o_ref.dtype)


# ---------------------------------------------------------------- sizing helpers
def _vmem_capacity_bytes():
    """Physical VMEM of the current chip; conservative default if query fails."""
    try:
        return int(pltpu.get_tpu_info().vmem_capacity_bytes)
    except Exception:
        return 64 << 20  # v7x per-TensorCore VMEM (smallest current generation)


def _sublane_multiple(dtype):
    """Native sublane packing: 8 rows for 32-bit, 16 for bf16, 32 for int8/fp8."""
    itemsize = jnp.dtype(dtype).itemsize
    return max(8, 32 // max(1, itemsize))


def _pick_tile_b(B, row_bytes, dtype, *, target_bytes, min_steps=2):
    """Rows per block: ~target_bytes blocks, dtype-aware sublane multiple,
    capped so the grid has at least `min_steps` steps when the batch allows it."""
    sub = _sublane_multiple(dtype)
    if B <= sub:
        return B  # full-batch block (full array extent is always legal)
    tile = max(sub, target_bytes // max(1, row_bytes))
    tile = (tile // sub) * sub
    if B >= min_steps * sub:
        # Guarantee >= min_steps grid steps so v7x's two TensorCores both stream.
        cap = max(sub, (pl.cdiv(B, min_steps) // sub) * sub)
        tile = min(tile, cap)
    tile = min(tile, (B // sub) * sub)  # keep block sublane-aligned; tail block is masked
    return max(sub, tile)


# ---------------------------------------------------------------- wrapper
def relu_bias(x, *, tile_b=None, donate=True):
    """Pallas implementation of ReLUBias.forward.

    `donate=True` is a performance contract: call via jax.jit(..., donate_argnums=(0,))
    so the in-place aliased half-only fast path actually saves HBM traffic. When the
    input cannot be donated pass donate=False to stream the full row instead.
    """
    B, F_dim = x.shape
    assert F_dim % 2 == 0, "feature dim must be even (L = F // 2)"
    L = F_dim // 2
    itemsize = jnp.dtype(x.dtype).itemsize

    vmem_cap = _vmem_capacity_bytes()
    # ~4 MiB blocks; back off on a hypothetical tiny-VMEM part (4 live buffers).
    target_bytes = min(4 << 20, max(1 << 20, vmem_cap // 16))

    use_half = donate and (L % 128 == 0)
    if use_half:
        kernel = _relubias_half_kernel
        block_w, col_block, row_bytes = L, 1, L * itemsize
    else:
        kernel = _relubias_full_kernel
        block_w, col_block, row_bytes = F_dim, 0, F_dim * itemsize

    if tile_b is None:
        tile_b = _pick_tile_b(B, row_bytes, x.dtype, target_bytes=target_bytes)

    block_bytes = tile_b * block_w * itemsize
    # in + out, double-buffered = 4 live buffers; give generous headroom, stay physical.
    vmem_limit = int(min(vmem_cap, max(32 << 20, 6 * block_bytes)))

    grid = (pl.cdiv(B, tile_b),)
    index_map = lambda i: (i, col_block)

    return pl.pallas_call(
        kernel,
        out_shape=jax.ShapeDtypeStruct((B, F_dim), x.dtype),
        grid_spec=pl.GridSpec(
            grid=grid,
            in_specs=[pl.BlockSpec((tile_b, block_w), index_map)],
            out_specs=pl.BlockSpec((tile_b, block_w), index_map),
        ),
        # Alias only when the caller promises donation; aliasing without donation
        # makes XLA insert a full defensive copy (more traffic than full-width path).
        input_output_aliases={0: 0} if donate else {},
        compiler_params=pltpu.CompilerParams(
            dimension_semantics=("parallel",),
            vmem_limit_bytes=vmem_limit,
        ),
    )(x)


def init_params():
    """Deterministic init matching ReLUBias.__init__ shapes (unused by forward)."""
    key = jax.random.PRNGKey(0)
    k_w, k_b = jax.random.split(key)
    bias = jnp.ones((1,), jnp.float32) * 0.1                      # nn.Parameter(ones(1)*0.1)
    bound = 1.0 / jnp.sqrt(784.0)
    lin1_w = jax.random.uniform(k_w, (1, 784), jnp.float32, -bound, bound)
    lin1_b = jax.random.uniform(k_b, (1,), jnp.float32, -bound, bound)
    # TODO(synk): bias / lin1 are dead parameters in the PyTorch forward; kept for shape parity.
    return {"bias": bias, "lin1_w": lin1_w, "lin1_b": lin1_b}


def _reference(x):
    L = x.shape[1] // 2
    return x.at[:, L:].set(jnp.maximum(x[:, L:], 0.0) + 0.1)


if __name__ == "__main__":
    params = init_params()  # shape parity with __init__; forward ignores them

    # Donated (in-place) entry point and a non-donated ("copy") entry point.
    run_inplace = jax.jit(relu_bias, donate_argnums=(0,),
                          static_argnames=("tile_b", "donate"))
    run_copy = jax.jit(lambda x: relu_bias(x, donate=False))

    # --- fast path: L = 128 (lane-aligned), second-half-only aliased kernel ---
    x = jax.random.normal(jax.random.PRNGKey(0), (8, 256), dtype=jnp.float32)
    ref = _reference(x)                          # compute reference BEFORE donating x
    out = jax.block_until_ready(run_inplace(x))  # x donated here
    assert out.shape == ref.shape and out.dtype == ref.dtype
    assert jnp.allclose(out, ref, atol=1e-6), "fast-path mismatch vs reference"

    # --- fast path with multi-step grid and a partial tail block (B=20, tile_b=8) ---
    x1 = jax.random.normal(jax.random.PRNGKey(2), (20, 256), dtype=jnp.float32)
    ref1 = _reference(x1)
    out1 = jax.block_until_ready(run_inplace(x1))
    assert jnp.allclose(out1, ref1, atol=1e-6), "partial-block fast-path mismatch"

    # --- fallback path: L = 16 (not a multiple of 128), full-width lane-dense kernel ---
    x2 = jax.random.normal(jax.random.PRNGKey(1), (4, 32), dtype=jnp.float32)
    ref2 = _reference(x2)
    out2 = jax.block_until_ready(run_inplace(x2))
    assert jnp.allclose(out2, ref2, atol=1e-6), "fallback-path mismatch vs reference"

    # --- non-donated call: routes to full-width kernel with no aliasing ---
    x3 = jax.random.normal(jax.random.PRNGKey(3), (8, 256), dtype=jnp.float32)
    ref3 = _reference(x3)
    out3 = jax.block_until_ready(run_copy(x3))
    assert jnp.allclose(out3, ref3, atol=1e-6), "non-donated-path mismatch vs reference"

    print("KERNEL_OK")
</pallas_src>

<mosaic_0001>
module attributes {stable_mosaic.version = 11 : i64} {
  func.func @_relubias_half_kernel(%arg0: i32, %arg1: memref<8x128xf32, #tpu.memory_space<vmem>>, %arg2: memref<8x128xf32, #tpu.memory_space<vmem>>) attributes {dimension_semantics = [#tpu.dimension_semantics<parallel>], iteration_bounds = array<i64: 1>, scalar_prefetch = 0 : i64, scratch_operands = 0 : i64, tpu.core_type = #tpu.core_type<tc>, window_params = [{transform_indices = @transform_0, window_bounds = array<i64: 8, 128>}, {transform_indices = @transform_1, window_bounds = array<i64: 8, 128>}]} {
    %c0 = arith.constant 0 : index
    %c0_0 = arith.constant 0 : index
    %0 = vector.load %arg1[%c0, %c0_0] : memref<8x128xf32, #tpu.memory_space<vmem>>, vector<8x128xf32>
    %cst = arith.constant 0.000000e+00 : f32
    %1 = vector.broadcast %cst : f32 to vector<8x128xf32>
    %2 = arith.maximumf %0, %1 : vector<8x128xf32>
    %cst_1 = arith.constant 1.000000e-01 : f32
    %3 = vector.broadcast %cst_1 : f32 to vector<8x128xf32>
    %4 = arith.addf %2, %3 : vector<8x128xf32>
    %c0_2 = arith.constant 0 : index
    %c0_3 = arith.constant 0 : index
    %5 = vector.load %arg2[%c0_2, %c0_3] : memref<8x128xf32, #tpu.memory_space<vmem>>, vector<8x128xf32>
    tpu.vector_store %arg2[%c0_2, %c0_3], %4 {strides = array<i32>} : memref<8x128xf32, #tpu.memory_space<vmem>>, vector<8x128xf32>,
    return
  }
  func.func @transform_0(%arg0: i32) -> (i32, i32) {
    %c1_i32 = arith.constant 1 : i32
    %c0_i32 = arith.constant 0 : i32
    return %arg0, %c1_i32 : i32, i32
  }
  func.func @transform_1(%arg0: i32) -> (i32, i32) {
    %c1_i32 = arith.constant 1 : i32
    %c0_i32 = arith.constant 0 : i32
    return %arg0, %c1_i32 : i32, i32
  }
}

</mosaic_0001>

<bundles_post_ra>
// kernel: relu_bias.1
= control target key start
LH: loop header
LB: loop body
LE: loop exit
PB: predicated region body
PF: predicated region fallthrough
CT: control target
= control target key end

     0   :  { %6 = vsyncpa [#allocation3], 0  ;;  %s112_s0 = inlined_call_operand.hbm [shape: f32[8,256], index: 0, kind: input, shape index: {}, may-alias: {0,1}]   ;;  %s113_s1 = inlined_call_operand.hbm [shape: f32[8,256], index: 1, kind: output, shape index: {}, may-alias: {0,1}]  }
   0x1   :  { %7 = vsyncpa [#allocation4], 0  ;;  %s13_s8 = scalar_lea.hbm %s112_s0, 128  ;;  %s94_s9 = smov [#allocation2]  }
   0x2   :  { %s15_s10 = sshll.u32 %s94_s9, 4  ;;  %s16_s10 = int_to_ptr.vmem [resolvable:$true] %s15_s10 }
   0x3   :  { %s54_s11 = scalar_lea.vmem %s16_s10, 128  ;;  %p59_p1 = scmp.lt.s32.totalorder %s16_s10, %s16_s10 }
   0x4   :  { %p55_p0 = scmp.ne.s32.totalorder %s16_s10, %s54_s11  ;;  %p60_p2 = scmp.lt.s32.totalorder %s54_s11, %s54_s11 }
   0x6   :  { %p61_p3 = por %p60_p2, %p59_p1 }
   0x8   :  { %p62_p4 = pnand %p61_p3, %p55_p0 }
   0xa   :  { %65 = shalt.err (!%p62_p4)
}
   0xb   :  { %18 = dma.hbm_to_vmem [thread:$0]  %s13_s8, 128, %s16_s10, [#allocation3]  }
   0xc   :  { %90 = dma.done.wait [#allocation3], 128  }
   0xd   :  { %91 = vsyncadd [#allocation3], 4294967168  ;;  %v22_v0 = vld [vmem:[#allocation2] sm:$0xff]  ;;  %s95_s12 = smov [#allocation5]   ;;  %s31_s15 = scalar_lea.hbm %s113_s1, 128 }
   0xe   :  { %s33_s13 = sshll.u32 %s95_s12, 4  ;;  %v23_v1 = vmax.f32 %v22_v0, 0.0  ;;  %s34_s13 = int_to_ptr.vmem [resolvable:$true] %s33_s13 }
   0xf   :  { %s67_s16 = scalar_lea.vmem %s34_s13, 128  ;;  %p72_p6 = scmp.lt.s32.totalorder %s34_s13, %s34_s13 }
  0x10   :  { %v24_v2 = vadd.f32 0.1, %v23_v1  ;;  %p68_p5 = scmp.ne.s32.totalorder %s34_s13, %s67_s16  ;;  %p73_p7 = scmp.lt.s32.totalorder %s67_s16, %s67_s16 }
  0x12   :  { %25 = vst [vmem:[#allocation5] sm:$0xff] %v24_v2  ;;  %p74_p8 = por %p73_p7, %p72_p6 }
  0x14   :  { %p75_p9 = pnand %p74_p8, %p68_p5 }
  0x16   :  { %78 = shalt.err (!%p75_p9)
}
  0x17   :  { %36 = dma.vmem_to_hbm [thread:$0]  %s34_s13, 128, %s31_s15, [#allocation4]  }
  0x18   :  { %92 = dma.done.wait [#allocation4], 128  }
  0x19   :  { %93 = vsyncadd [#allocation4], 4294967168 }
  0x1a   :  { %40 = vsyncpa [#allocation3], 1 }
  0x1b   :  { %41 = vsyncpa [#allocation4], 1 }

</bundles_post_ra>
